<compile_context>
chip_gen: v5e
topology: v5e:2x2
jax: 0.10.0
libtpu: 0.0.40
codegen_flags: <defaults>
</compile_context>

<pallas_src>
import jax
import jax.numpy as jnp
from jax.experimental import pallas as pl
from jax.experimental.pallas import tpu as pltpu


def bert_classifier_kernel(tok_ref, seg_ref, vlen_ref,
                           emb_pool_ref,                 # (Vp, Hp) bf16  fused_emb @ w_pool
                           b_pool_ref,                    # (1, Hp)  f32
                           w_cls_ref,                     # (Hp, Cp) bf16
                           b_cls_ref,                     # (1, Cp)  f32
                           out_ref):                      # (Bp, Cp) f32
    B, S = tok_ref.shape
    VP = emb_pool_ref.shape[0]

    # ---- gen_attention_mask: valid[b, s] = (s < valid_length[b]) ----
    pos = jax.lax.broadcasted_iota(jnp.int32, (B, S), 1)
    valid = pos < vlen_ref[...]                                      # (B, S) bool

    # ---- fold the mask into the ids: invalid positions get an out-of-range id (== VP)
    #      that can never match the iota below, so they contribute nothing to counts ----
    oor = jnp.int32(VP)
    tok_m = jnp.where(valid, tok_ref[...], oor)                      # (B, S) int32
    seg_m = jnp.where(valid, seg_ref[...], oor)                      # (B, S) int32 (shifted by V)

    # ---- count matrix: counts[b, v] = #{s : valid & fused_id(b,s) == v} ----
    # Token rows [0,V) and segment rows [V,V+NSEG) are disjoint, so the two one-hot
    # count tensors can simply be added (no boolean OR / select needed).
    iota_v = jax.lax.broadcasted_iota(jnp.int32, (1, 1, VP), 2)      # broadcast, not materialized
    hits = ((tok_m[:, :, None] == iota_v).astype(jnp.int32)
            + (seg_m[:, :, None] == iota_v).astype(jnp.int32))       # (B, S, Vp) int32
    counts = jnp.sum(hits, axis=1)                                    # (B, Vp) int32
    counts_bf = counts.astype(jnp.bfloat16)                           # exact: counts <= 2*S = 16

    # ---- masked mean pooling + pooler dense fused into ONE bf16 MXU matmul ----
    # mask_sum comes straight from valid_length (clamped -> no div-by-zero); only B scalars,
    # so exact division is free.
    inv_len = 1.0 / jnp.clip(vlen_ref[...], 1, S).astype(jnp.float32)             # (B, 1)
    pre = jnp.dot(counts_bf, emb_pool_ref[...],
                  preferred_element_type=jnp.float32) * inv_len                    # (B, Hp)
    pooler = jnp.tanh(pre + b_pool_ref[...])                                       # (B, Hp)

    # ---- classifier head: nn.Linear(hidden_size, num_classes), lane-dense output ----
    out_ref[...] = (
        jnp.dot(pooler.astype(jnp.bfloat16), w_cls_ref[...],
                preferred_element_type=jnp.float32)
        + b_cls_ref[...])                                                           # (Bp, Cp)


def _round_up(x, m):
    return ((x + m - 1) // m) * m


def bert_classifier_forward(token_ids, valid_length, segment_ids, params):
    B, S = token_ids.shape
    tok_emb = params["tok_emb"]
    seg_emb = params["seg_emb"]
    V, H = tok_emb.shape
    NSEG = seg_emb.shape[0]
    C = params["w_cls"].shape[1]

    LANE, SUBLANE = 128, 8
    VP = _round_up(V + NSEG, LANE)    # fused vocab rows (token + segment), lane-padded
    HP = _round_up(H, LANE)
    CP = _round_up(C, LANE)
    BP = _round_up(B, SUBLANE)        # sublane-pad the batch -> unmasked stores / full vregs

    # Fused, zero-padded embedding table with the pooler dense folded in offline (f32 matmul,
    # then bf16).  Padding is exact: padded lanes stay 0 through tanh(0)=0 and padded w_cls
    # rows/cols are 0, so the sliced logits are unchanged.
    emb = jnp.zeros((VP, HP), jnp.float32)
    emb = emb.at[:V, :H].set(tok_emb).at[V:V + NSEG, :H].set(seg_emb)
    w_pool = jnp.zeros((HP, HP), jnp.float32).at[:H, :H].set(params["w_pool"])
    emb_pool = jnp.dot(emb, w_pool).astype(jnp.bfloat16)                         # (Vp, Hp) bf16

    b_pool = jnp.zeros((1, HP), jnp.float32).at[:, :H].set(params["b_pool"].reshape(1, H))
    w_cls = (jnp.zeros((HP, CP), jnp.float32).at[:H, :C].set(params["w_cls"])
             .astype(jnp.bfloat16))
    b_cls = jnp.zeros((1, CP), jnp.float32).at[:, :C].set(params["b_cls"].reshape(1, C))

    # Batch-padded integer inputs (padded rows: id 0, valid_length 1 -> harmless, sliced off).
    tok_p = jnp.zeros((BP, S), jnp.int32).at[:B].set(token_ids.astype(jnp.int32))
    seg_p = jnp.zeros((BP, S), jnp.int32).at[:B].set(segment_ids.astype(jnp.int32) + V)
    vlen_p = jnp.ones((BP, 1), jnp.int32).at[:B].set(
        valid_length.reshape(B, 1).astype(jnp.int32))

    vmem = pl.BlockSpec(memory_space=pltpu.MemorySpace.VMEM)
    out_padded = pl.pallas_call(
        bert_classifier_kernel,
        out_shape=jax.ShapeDtypeStruct((BP, CP), jnp.float32),
        in_specs=[vmem] * 7,
        out_specs=vmem,
        compiler_params=pltpu.CompilerParams(vmem_limit_bytes=64 * 1024 * 1024),
    )(tok_p, seg_p, vlen_p, emb_pool, b_pool, w_cls, b_cls)

    return out_padded[:B, :C]


def init_params(key, vocab=64, hidden=32, num_classes=60):
    ks = jax.random.split(key, 6)
    scale = 0.02
    return {
        "tok_emb": scale * jax.random.normal(ks[0], (vocab, hidden), jnp.float32),
        "seg_emb": scale * jax.random.normal(ks[1], (2, hidden), jnp.float32),
        "w_pool": scale * jax.random.normal(ks[2], (hidden, hidden), jnp.float32),
        "b_pool": jnp.zeros((1, hidden), jnp.float32),
        "w_cls": scale * jax.random.normal(ks[3], (hidden, num_classes), jnp.float32),
        "b_cls": jnp.zeros((1, num_classes), jnp.float32),
    }


if __name__ == "__main__":
    key = jax.random.PRNGKey(0)
    B, S, VOCAB, HIDDEN, NUM_CLASSES = 2, 8, 64, 32, 60

    k_tok, k_seg, k_len, k_par = jax.random.split(key, 4)
    token_ids = jax.random.randint(k_tok, (B, S), 0, VOCAB, dtype=jnp.int32)
    segment_ids = jax.random.randint(k_seg, (B, S), 0, 2, dtype=jnp.int32)
    valid_length = jax.random.randint(k_len, (B,), 1, S + 1, dtype=jnp.int32)

    params = init_params(k_par, vocab=VOCAB, hidden=HIDDEN, num_classes=NUM_CLASSES)

    logits = bert_classifier_forward(token_ids, valid_length, segment_ids, params)
    jax.block_until_ready(logits)
    assert logits.shape == (B, NUM_CLASSES)
    print("KERNEL_OK")
</pallas_src>

<mosaic_0001>
module attributes {stable_mosaic.version = 11 : i64} {
  func.func @bert_classifier_kernel(%arg0: memref<8x8xi32, #tpu.memory_space<vmem>>, %arg1: memref<8x8xi32, #tpu.memory_space<vmem>>, %arg2: memref<8x1xi32, #tpu.memory_space<vmem>>, %arg3: memref<128x128xbf16, #tpu.memory_space<vmem>>, %arg4: memref<1x128xf32, #tpu.memory_space<vmem>>, %arg5: memref<128x128xbf16, #tpu.memory_space<vmem>>, %arg6: memref<1x128xf32, #tpu.memory_space<vmem>>, %arg7: memref<8x128xf32, #tpu.memory_space<vmem>>) attributes {dimension_semantics = [], scalar_prefetch = 0 : i64, scratch_operands = 0 : i64, tpu.core_type = #tpu.core_type<tc>} {
    %0 = tpu.iota {dimensions = array<i32: 1>} : vector<8x8xi32>
    %c0 = arith.constant 0 : index
    %c0_0 = arith.constant 0 : index
    %1 = vector.load %arg2[%c0, %c0_0] : memref<8x1xi32, #tpu.memory_space<vmem>>, vector<8x1xi32>
    %2 = vector.broadcast %1 : vector<8x1xi32> to vector<8x8xi32>
    %3 = arith.cmpi slt, %0, %2 : vector<8x8xi32>
    %c0_1 = arith.constant 0 : index
    %c0_2 = arith.constant 0 : index
    %4 = vector.load %arg0[%c0_1, %c0_2] : memref<8x8xi32, #tpu.memory_space<vmem>>, vector<8x8xi32>
    %c128_i32 = arith.constant 128 : i32
    %5 = vector.broadcast %c128_i32 : i32 to vector<8x8xi32>
    %6 = arith.select %3, %4, %5 : vector<8x8xi1>, vector<8x8xi32>
    %c0_3 = arith.constant 0 : index
    %c0_4 = arith.constant 0 : index
    %7 = vector.load %arg1[%c0_3, %c0_4] : memref<8x8xi32, #tpu.memory_space<vmem>>, vector<8x8xi32>
    %c128_i32_5 = arith.constant 128 : i32
    %8 = vector.broadcast %c128_i32_5 : i32 to vector<8x8xi32>
    %9 = arith.select %3, %7, %8 : vector<8x8xi1>, vector<8x8xi32>
    %10 = tpu.iota {dimensions = array<i32: 2>} : vector<1x1x128xi32>
    %11 = vector.shape_cast %6 : vector<8x8xi32> to vector<8x8x1xi32>
    %12 = vector.broadcast %11 : vector<8x8x1xi32> to vector<8x8x128xi32>
    %13 = vector.broadcast %10 : vector<1x1x128xi32> to vector<8x8x128xi32>
    %14 = arith.cmpi eq, %12, %13 : vector<8x8x128xi32>
    %15 = arith.extui %14 : vector<8x8x128xi1> to vector<8x8x128xi32>
    %16 = vector.shape_cast %9 : vector<8x8xi32> to vector<8x8x1xi32>
    %17 = vector.broadcast %16 : vector<8x8x1xi32> to vector<8x8x128xi32>
    %18 = vector.broadcast %10 : vector<1x1x128xi32> to vector<8x8x128xi32>
    %19 = arith.cmpi eq, %17, %18 : vector<8x8x128xi32>
    %20 = arith.extui %19 : vector<8x8x128xi1> to vector<8x8x128xi32>
    %21 = arith.addi %15, %20 : vector<8x8x128xi32>
    %cst = arith.constant dense<0> : vector<8x128xi32>
    %22 = vector.multi_reduction <add>, %21, %cst [1] : vector<8x8x128xi32> to vector<8x128xi32>
    %23 = arith.sitofp %22 : vector<8x128xi32> to vector<8x128xbf16>
    %c0_6 = arith.constant 0 : index
    %c0_7 = arith.constant 0 : index
    %24 = vector.load %arg2[%c0_6, %c0_7] : memref<8x1xi32, #tpu.memory_space<vmem>>, vector<8x1xi32>
    %c1_i32 = arith.constant 1 : i32
    %c8_i32 = arith.constant 8 : i32
    %25 = vector.broadcast %c1_i32 : i32 to vector<8x1xi32>
    %26 = arith.maxsi %25, %24 : vector<8x1xi32>
    %27 = vector.broadcast %c8_i32 : i32 to vector<8x1xi32>
    %28 = arith.minsi %27, %26 : vector<8x1xi32>
    %29 = arith.sitofp %28 : vector<8x1xi32> to vector<8x1xf32>
    %cst_8 = arith.constant 1.000000e+00 : f32
    %30 = vector.broadcast %cst_8 : f32 to vector<8x1xf32>
    %31 = arith.divf %30, %29 : vector<8x1xf32>
    %c0_9 = arith.constant 0 : index
    %c0_10 = arith.constant 0 : index
    %32 = vector.load %arg3[%c0_9, %c0_10] : memref<128x128xbf16, #tpu.memory_space<vmem>>, vector<128x128xbf16>
    %cst_11 = arith.constant dense<0.000000e+00> : vector<8x128xf32>
    %33 = tpu.matmul %23, %32, %cst_11 {dimension_numbers = #tpu.dot_dimension_numbers<[1], [0], [0], [1], [0, 0, 1, 1], [], []>} : vector<8x128xbf16>, vector<128x128xbf16>, vector<8x128xf32> -> vector<8x128xf32>
    %34 = vector.broadcast %31 : vector<8x1xf32> to vector<8x128xf32>
    %35 = arith.mulf %33, %34 : vector<8x128xf32>
    %c0_12 = arith.constant 0 : index
    %c0_13 = arith.constant 0 : index
    %36 = vector.load %arg4[%c0_12, %c0_13] : memref<1x128xf32, #tpu.memory_space<vmem>>, vector<1x128xf32>
    %37 = vector.broadcast %36 : vector<1x128xf32> to vector<8x128xf32>
    %38 = arith.addf %35, %37 : vector<8x128xf32>
    %39 = math.tanh %38 : vector<8x128xf32>
    %40 = arith.truncf %39 : vector<8x128xf32> to vector<8x128xbf16>
    %c0_14 = arith.constant 0 : index
    %c0_15 = arith.constant 0 : index
    %41 = vector.load %arg5[%c0_14, %c0_15] : memref<128x128xbf16, #tpu.memory_space<vmem>>, vector<128x128xbf16>
    %cst_16 = arith.constant dense<0.000000e+00> : vector<8x128xf32>
    %42 = tpu.matmul %40, %41, %cst_16 {dimension_numbers = #tpu.dot_dimension_numbers<[1], [0], [0], [1], [0, 0, 1, 1], [], []>} : vector<8x128xbf16>, vector<128x128xbf16>, vector<8x128xf32> -> vector<8x128xf32>
    %c0_17 = arith.constant 0 : index
    %c0_18 = arith.constant 0 : index
    %43 = vector.load %arg6[%c0_17, %c0_18] : memref<1x128xf32, #tpu.memory_space<vmem>>, vector<1x128xf32>
    %44 = vector.broadcast %43 : vector<1x128xf32> to vector<8x128xf32>
    %45 = arith.addf %42, %44 : vector<8x128xf32>
    %c0_19 = arith.constant 0 : index
    %c0_20 = arith.constant 0 : index
    %46 = vector.load %arg7[%c0_19, %c0_20] : memref<8x128xf32, #tpu.memory_space<vmem>>, vector<8x128xf32>
    tpu.vector_store %arg7[%c0_19, %c0_20], %45 {strides = array<i32>} : memref<8x128xf32, #tpu.memory_space<vmem>>, vector<8x128xf32>,
    return
  }
}

</mosaic_0001>

<bundles_post_ra>
// kernel: tpu_custom_call.1
= control target key start
LH: loop header
LB: loop body
LE: loop exit
PB: predicated region body
PF: predicated region fallthrough
CT: control target
= control target key end

     0   :  { %12 = vsyncpa [#allocation3], 0  ;;  %s874_s0 = inlined_call_operand.vmem [shape: s32[8,8], index: 0, kind: input, shape index: {}]   ;;  %s875_s1 = inlined_call_operand.hbm [shape: s32[8,8], index: 1, kind: input, shape index: {}]   ;;  %s876_s2 = inlined_call_operand.vmem [shape: s32[8,1], index: 2, kind: input, shape index: {}]   ;;  %s877_s3 = inlined_call_operand.hbm [shape: bf16[128,128], index: 3, kind: input, shape index: {}]   ;;  %s878_s4 = inlined_call_operand.vmem [shape: f32[1,128], index: 4, kind: input, shape index: {}]   ;;  %s879_s5 = inlined_call_operand.hbm [shape: bf16[128,128], index: 5, kind: input, shape index: {}]   ;;  %s880_s6 = inlined_call_operand.vmem [shape: f32[1,128], index: 6, kind: input, shape index: {}]   ;;  %s881_s7 = inlined_call_operand.hbm [shape: f32[8,128], index: 7, kind: output, shape index: {}]  }
   0x1   :  { %13 = vsyncpa [#allocation6], 0  ;;  %s34_s26 = sshll.u32 %s877_s3, 4  ;;  %s35_s26 = int_to_ptr.hbm [resolvable:$true] %s34_s26 }
   0x2   :  { %14 = vsyncpa [#allocation4], 0  ;;  %s741_s27 = smov [#allocation5]   ;;  %s22_s8 = sshll.u32 %s875_s1, 4  ;;  %s23_s8 = int_to_ptr.hbm [resolvable:$true] %s22_s8 }
   0x3   :  { %s36_s28 = sshll.u32 %s741_s27, 4  ;;  %s742_s9 = smov 64   ;;  %s37_s28 = int_to_ptr.vmem [resolvable:$true] %s36_s28 }
   0x4   :  { %s743_s10 = smov 4   ;;  %s744_s11 = smov [#allocation2]  }
   0x5   :  { %42 = dma.hbm_to_vmem [thread:$0]  %s35_s26, 1024, %s37_s28, [#allocation6], %s742_s9, %s742_s9, %s743_s10  }
   0x6   :  { %s24_s12 = sshll.u32 %s744_s11, 4  ;;  %s49_s15 = sshll.u32 %s879_s5, 4  ;;  %s25_s12 = int_to_ptr.vmem [resolvable:$true] %s24_s12  ;;  %s50_s15 = int_to_ptr.hbm [resolvable:$true] %s49_s15 }
   0x7   :  { %27 = dma.hbm_to_vmem [thread:$0]  %s23_s8, 128, %s25_s12, [#allocation3]  }
   0x8   :  { %s745_s3 = smov [#allocation7]  }
   0x9   :  { %s51_s16 = sshll.u32 %s745_s3, 4  ;;  %s52_s16 = int_to_ptr.vmem [resolvable:$true] %s51_s16 }
   0xa   :  { %57 = dma.hbm_to_vmem [thread:$0]  %s50_s15, 1024, %s52_s16, [#allocation6], %s742_s9, %s742_s9, %s743_s10  }
   0xb   :  { %735 = dma.done.wait [#allocation3], 128  }
   0xc   :  { %736 = vsyncadd [#allocation3], 4294967168 }
   0xd   :  { %737 = dma.done.wait [#allocation6], 2048  }
   0xe   :  { %738 = vsyncadd [#allocation6], 4294965248  ;;  %v72_v0 = vlaneseq  ;;  %v746_v1 = vmov 0   ;;  %v801_v3 = vld [vmem:[%s876_s2] sm:$0xff]  ;;  %v611_v36 = vld [vmem:[#allocation5 + $0x30] sm:$0xff]  ;;  %s747_s21 = smov [#allocation8]  }
   0xf   :  { %628 = vset.pattern.permute.xlu0 %v746_v1  ;;  %v79_v5 = vld [vmem:[%s874_s0] sm:$0xff]  ;;  %vm299_vm3 = vcmp.gt.s32.totalorder %v801_v3, 1  ;;  %v610_v43 = vld [vmem:[#allocation5 + $0x28] sm:$0xff]  ;;  %v609_v48 = vld [vmem:[#allocation5 + $0x20] sm:$0xff]  ;;  %s528_s22 = sshll.u32 %s747_s21, 4  ;;  %s530_s25 = sshll.u32 %s881_s7, 4  ;;  %s529_s22 = int_to_ptr.vmem [resolvable:$true] %s528_s22  ;;  %s531_s25 = int_to_ptr.hbm [resolvable:$true] %s530_s25 }
  0x10   :  { %v85_v2 = vshrl.u32 %v72_v0, 7  ;;  %76 = vperm.xlu0 %628, %v801_v3   ;;  %v804_v4 = vand.u32 127, %v72_v0  ;;  %v81_v6 = vld [vmem:[#allocation2] sm:$0xff]  ;;  %v300_v40 = vsel %vm299_vm3, %v801_v3, 1  ;;  %v607_v0 = vld [vmem:[#allocation5 + $0x10] sm:$0xff] }
  0x11   :  { %v612_v31 = vld [vmem:[#allocation5 + $0x38] sm:$0xff]  ;;  %vm301_vm8 = vcmp.lt.s32.totalorder %v300_v40, 8 }
  0x12   :  { %631 = vset.pattern.permute.xlu2 %v85_v2  ;;  %630 = vset.pattern.permute.xlu1 %v85_v2  ;;  %v302_v52 = vsel %vm301_vm8, %v300_v40, 8  ;;  %v608_v58 = vld [vmem:[#allocation5 + $0x18] sm:$0xff]  ;;  %vm353_vm8 = vcmask 1042434  }
  0x13   :  { %415 = vmatpush.bf16.msra.mxu0 %v612_v31  ;;  %v829_v59 = vcvt.s32.f32 %v302_v52 }
  0x15   :  { %635 = vrcp.f32 %v829_v59 }
  0x17   :  { %416 = vmatpush.bf16.msra.mxu0 %v611_v36  ;;  %v620_v36 = vld [vmem:[#allocation7 + $0x38] sm:$0xff] }
  0x18   :  { %629 = vset.pattern.permute.xlu0 %v85_v2  ;;  %509 = vmatpush.bf16.msra.mxu1 %v620_v36 }
  0x1b   :  { %417 = vmatpush.bf16.msra.mxu0 %v610_v43  ;;  %v315_v43 = vand.u32 2147483648, %v829_v59 }
  0x1f   :  { %418 = vmatpush.bf16.msra.mxu0 %v609_v48 }
  0x23   :  { %419 = vmatpush.bf16.msra.mxu0 %v608_v58  ;;  %v618_v58 = vld [vmem:[#allocation7 + $0x28] sm:$0xff] }
  0x27   :  { %420 = vmatpush.bf16.msra.mxu0 %v607_v0 }
  0x82   :  { %v77_v7 = vpop.permute.xlu0 %76 }
  0x83   :  { %vm78_vm0 = vcmp.lt.s32.totalorder %v804_v4, %v77_v7 }
  0x84   :  { %v80_v8 = vsel %vm78_vm0, %v79_v5, 128  ;;  %v82_v9 = vsel %vm78_vm0, %v81_v6, 128 }
  0x85   :  { %v162_v10 = vperm.slane %v82_v9, 1  ;;  %v90_v11 = vperm.slane %v80_v8, 1  ;;  %v83_v12 = vperm.slane %v80_v8, 0  ;;  %v97_v13 = vperm.slane %v80_v8, 2 }
  0x86   :  { %v155_v14 = vperm.slane %v82_v9, 0  ;;  %v176_v15 = vperm.slane %v82_v9, 3  ;;  %v104_v16 = vperm.slane %v80_v8, 3  ;;  %v169_v17 = vperm.slane %v82_v9, 2 }
  0x87   :  { %167 = vperm.xlu2 %631, %v162_v10   ;;  %95 = vperm.xlu1 %630, %v90_v11   ;;  %v118_v18 = vperm.slane %v80_v8, 5  ;;  %v183_v19 = vperm.slane %v82_v9, 4  ;;  %v111_v20 = vperm.slane %v80_v8, 4  ;;  %v197_v21 = vperm.slane %v82_v9, 6 }
  0x88   :  { %88 = vperm.xlu0 %629, %v83_v12   ;;  %v125_v22 = vperm.slane %v80_v8, 6  ;;  %v190_v23 = vperm.slane %v82_v9, 5  ;;  %v204_v24 = vperm.slane %v82_v9, 7  ;;  %v132_v25 = vperm.slane %v80_v8, 7  ;;  %v606_v12 = vld [vmem:[#allocation5 + $0x8] sm:$0xff] }
  0x89   :  { %421 = vmatpush.bf16.msra.mxu0 %v606_v12 }
  0x8f   :  { %102 = vperm.xlu2 %631, %v97_v13   ;;  %160 = vperm.xlu1 %630, %v155_v14  }
  0x90   :  { %181 = vperm.xlu0 %629, %v176_v15  }
  0x97   :  { %109 = vperm.xlu2 %631, %v104_v16   ;;  %174 = vperm.xlu1 %630, %v169_v17  }
  0x98   :  { %123 = vperm.xlu0 %629, %v118_v18  }
  0x9f   :  { %188 = vperm.xlu2 %631, %v183_v19   ;;  %116 = vperm.xlu1 %630, %v111_v20  }
  0xa0   :  { %202 = vperm.xlu0 %629, %v197_v21  }
  0xa7   :  { %130 = vperm.xlu2 %631, %v125_v22   ;;  %195 = vperm.xlu1 %630, %v190_v23   ;;  %v605_v23 = vld [vmem:[#allocation5] sm:$0xff] }
  0xa8   :  { %632 = vset.pattern.permute.xlu0 %v746_v1  ;;  %422 = vmatpush.bf16.msra.mxu0 %v605_v23 }
  0xaf   :  { %209 = vperm.xlu2 %631, %v204_v24   ;;  %137 = vperm.xlu1 %630, %v132_v25   ;;  %v636_v24 = vpop.eup %635 }
  0xe1   :  { %v168_v26 = vpop.permute.xlu2 %167 }
  0xe2   :  { %vm212_vm2 = vcmp.eq.s32.totalorder %v168_v26, %v804_v4 }
  0xe3   :  { %v220_v33 = vsel %vm212_vm2, 1, %v746_v1  ;;  %vm310_vm2 = vweird.f32 %v636_v24 }
  0xe9   :  { %v103_v27 = vpop.permute.xlu2 %102 }
  0xea   :  { %vm141_vm9 = vcmp.eq.s32.totalorder %v103_v27, %v804_v4 }
  0xeb   :  { %v149_v53 = vsel %vm141_vm9, 1, %v746_v1  ;;  %vm355_vm9 = vcmask 1043459  }
  0xf1   :  { %v110_v29 = vpop.permute.xlu2 %109 }
  0xf2   :  { %vm142_vm7 = vcmp.eq.s32.totalorder %v110_v29, %v804_v4 }
  0xf3   :  { %v150_v49 = vsel %vm142_vm7, 1, %v746_v1  ;;  %vm351_vm7 = vcmask 1041409  }
  0xf9   :  { %v96_v28 = vpop.permute.xlu1 %95  ;;  %v189_v39 = vpop.permute.xlu2 %188 }
  0xfa   :  { %v89_v30 = vpop.permute.xlu0 %88  ;;  %vm140_vm1 = vcmp.eq.s32.totalorder %v96_v28, %v804_v4  ;;  %vm215_vm11 = vcmp.eq.s32.totalorder %v189_v39, %v804_v4 }
  0xfb   :  { %v148_v32 = vsel %vm140_vm1, 1, %v746_v1  ;;  %vm139_vm4 = vcmp.eq.s32.totalorder %v89_v30, %v804_v4  ;;  %v223_v6 = vsel %vm215_vm11, 1, %v746_v1  ;;  %vm309_vm1 = vweird.f32 %v829_v59 }
  0xfc   :  { %v228_v34 = vadd.s32 %v220_v33, %v148_v32  ;;  %v147_v42 = vsel %vm139_vm4, 1, %v746_v1  ;;  %vm853_vm4 = vmor %vm309_vm1, %vm310_vm2  ;;  %vm359_vm11 = vcmask 1045509  }
  0xfe   :  { %v241_v41 = vrot.slane %v228_v34, 4 }
 0x100   :  { %v242_v46 = vadd.s32 %v241_v41, %v228_v34 }
 0x101   :  { %v161_v35 = vpop.permute.xlu1 %160  ;;  %v131_v60 = vpop.permute.xlu2 %130 }
 0x102   :  { %vm211_vm5 = vcmp.eq.s32.totalorder %v161_v35, %v804_v4  ;;  %v182_v37 = vpop.permute.xlu0 %181  ;;  %v243_v57 = vrot.slane %v242_v46, 2  ;;  %vm145_vm12 = vcmp.eq.s32.totalorder %v131_v60, %v804_v4  ;;  %v305_v35 = vmul.f32 %v636_v24, %v829_v59 }
 0x103   :  { %v219_v38 = vsel %vm211_vm5, 1, %v746_v1  ;;  %vm214_vm6 = vcmp.eq.s32.totalorder %v182_v37, %v804_v4  ;;  %v153_v13 = vsel %vm145_vm12, 1, %v746_v1  ;;  %vm361_vm12 = vcmask 1046534  }
 0x104   :  { %v227_v44 = vadd.s32 %v219_v38, %v147_v42  ;;  %v222_v45 = vsel %vm214_vm6, 1, %v746_v1  ;;  %v244_v3 = vadd.s32 %v243_v57, %v242_v46  ;;  %v306_v41 = vsub.f32 1.0, %v305_v35 }
 0x105   :  { %v230_v54 = vadd.s32 %v222_v45, %v150_v49  ;;  %v313_v42 = vand.u32 2147483647, %v829_v59 }
 0x106   :  { %v235_v50 = vrot.slane %v227_v44, 4  ;;  %v245_v16 = vrot.slane %v244_v3, 1  ;;  %v307_v49 = vmul.f32 %v636_v24, %v306_v41 }
 0x107   :  { %v253_v63 = vrot.slane %v230_v54, 4  ;;  %vm314_vm5 = vcmp.eq.f32.partialorder %v313_v42, 8.507059e+37 }
 0x108   :  { %v236_v61 = vadd.s32 %v235_v50, %v227_v44  ;;  %v841_v26 = vadd.s32 %v245_v16, %v244_v3  ;;  %v619_v44 = vld [vmem:[#allocation7 + $0x30] sm:$0xff]  ;;  %v308_v57 = vadd.f32 %v636_v24, %v307_v49  ;;  %v613_v49 = vld [vmem:[#allocation7] sm:$0xff] }
 0x109   :  { %v175_v47 = vpop.permute.xlu1 %174  ;;  %v254_v9 = vadd.s32 %v253_v63, %v230_v54  ;;  %v210_v37 = vpop.permute.xlu2 %209  ;;  %510 = vmatpush.bf16.msra.mxu1 %v619_v44 }
 0x10a   :  { %vm213_vm10 = vcmp.eq.s32.totalorder %v175_v47, %v804_v4  ;;  %v124_v51 = vpop.permute.xlu0 %123  ;;  %v237_v7 = vrot.slane %v236_v61, 2  ;;  %vm218_vm3 = vcmp.eq.s32.totalorder %v210_v37, %v804_v4  ;;  %v284_v54 = vcvt.s32.f32 %v841_v26 }
 0x10b   :  { %v221_v55 = vsel %vm213_vm10, 1, %v746_v1  ;;  %v255_v20 = vrot.slane %v254_v9, 2  ;;  %vm144_vm15 = vcmp.eq.s32.totalorder %v124_v51, %v804_v4  ;;  %vm357_vm10 = vcmask 1044484  }
 0x10c   :  { %v229_v56 = vadd.s32 %v221_v55, %v149_v53  ;;  %v238_v18 = vadd.s32 %v237_v7, %v236_v61  ;;  %v152_v30 = vsel %vm144_vm15, 1, %v746_v1  ;;  %v316_v53 = vor.u32 1.1754944e-38, %v315_v43 }
 0x10d   :  { %v256_v32 = vadd.s32 %v255_v20, %v254_v9  ;;  %v226_v61 = vsel %vm218_vm3, 1, %v746_v1  ;;  %511 = vmatpush.bf16.msra.mxu1 %v618_v58  ;;  %v617_v9 = vld [vmem:[#allocation7 + $0x20] sm:$0xff]  ;;  %v634_v58 = vld [vmem:[%s880_s6] ss:$0 sm:$0xff] }
 0x10e   :  { %v247_v62 = vrot.slane %v229_v56, 4  ;;  %v239_v29 = vrot.slane %v238_v18, 1 }
 0x10f   :  { %v257_v50 = vrot.slane %v256_v32, 1 }
 0x110   :  { %v248_v2 = vadd.s32 %v247_v62, %v229_v56  ;;  %v240_v45 = vadd.s32 %v239_v29, %v238_v18  ;;  %v616_v18 = vld [vmem:[#allocation7 + $0x18] sm:$0xff] }
 0x111   :  { %v117_v5 = vpop.permute.xlu1 %116  ;;  %v258_v3 = vadd.s32 %v257_v50, %v256_v32  ;;  %512 = vmatpush.bf16.msra.mxu1 %v617_v9 }
 0x112   :  { %vm143_vm13 = vcmp.eq.s32.totalorder %v117_v5, %v804_v4  ;;  %v203_v8 = vpop.permute.xlu0 %202  ;;  %v249_v10 = vrot.slane %v248_v2, 2  ;;  %v283_v60 = vcvt.s32.f32 %v240_v45 }
 0x113   :  { %v151_v11 = vsel %vm143_vm13, 1, %v746_v1  ;;  %vm217_vm14 = vcmp.eq.s32.totalorder %v203_v8, %v804_v4  ;;  %vm363_vm13 = vcmask 1047559  }
 0x114   :  { %v231_v14 = vadd.s32 %v223_v6, %v151_v11  ;;  %v225_v15 = vsel %vm217_vm14, 1, %v746_v1  ;;  %v250_v21 = vadd.s32 %v249_v10, %v248_v2  ;;  %v312_v2 = vsel %vm853_vm4, %v636_v24, %v308_v57 }
 0x115   :  { %v233_v17 = vadd.s32 %v225_v15, %v153_v13  ;;  %v317_v7 = vsel %vm314_vm5, %v316_v53, %v312_v2  ;;  %v291_v10 = vpack.c.bf16 %v283_v60, %v283_v60  ;;  %v286_v15 = vcvt.s32.f32 %v258_v3  ;;  %513 = vmatpush.bf16.msra.mxu1 %v616_v18 }
 0x116   :  { %v259_v19 = vrot.slane %v231_v14, 4  ;;  %v251_v33 = vrot.slane %v250_v21, 1  ;;  %430 = vperm.xlu0 %632, %v317_v7  }
 0x117   :  { %v271_v22 = vrot.slane %v233_v17, 4 }
 0x118   :  { %v260_v25 = vadd.s32 %v259_v19, %v231_v14  ;;  %v252_v47 = vadd.s32 %v251_v33, %v250_v21  ;;  %v292_v14 = vpack.c.bf16 %v284_v54, %v284_v54  ;;  %v343_v19 = vunpack.c.l.b16 %v291_v10 }
 0x119   :  { %v272_v27 = vadd.s32 %v271_v22, %v233_v17  ;;  %v196_v28 = vpop.permute.xlu1 %195 }
 0x11a   :  { %v261_v31 = vrot.slane %v260_v25, 2  ;;  %vm216_vm0 = vcmp.eq.s32.totalorder %v196_v28, %v804_v4  ;;  %v285_v59 = vcvt.s32.f32 %v252_v47  ;;  %v344_v24 = vunpack.c.l.b16 %v292_v14  ;;  %v615_v47 = vld [vmem:[#allocation7 + $0x10] sm:$0xff] }
 0x11b   :  { %v224_v34 = vsel %vm216_vm0, 1, %v746_v1  ;;  %v273_v39 = vrot.slane %v272_v27, 2  ;;  %514 = vmatpush.bf16.msra.mxu1 %v615_v47 }
 0x11c   :  { %v262_v38 = vadd.s32 %v261_v31, %v260_v25  ;;  %v232_v40 = vadd.s32 %v224_v34, %v152_v30  ;;  %v293_v13 = vpack.c.bf16 %v285_v59, %v285_v59  ;;  %v294_v25 = vpack.c.bf16 %v286_v15, %v286_v15 }
 0x11d   :  { %v274_v55 = vadd.s32 %v273_v39, %v272_v27  ;;  %v352_v29 = vsel %vm351_vm7, %v344_v24, %v343_v19 }
 0x11e   :  { %v265_v46 = vrot.slane %v232_v40, 4  ;;  %v263_v48 = vrot.slane %v262_v38, 1  ;;  %v345_v22 = vunpack.c.l.b16 %v293_v13  ;;  %v346_v33 = vunpack.c.l.b16 %v294_v25 }
 0x11f   :  { %v275_v8 = vrot.slane %v274_v55, 1 }
 0x120   :  { %v266_v51 = vadd.s32 %v265_v46, %v232_v40  ;;  %v264_v63 = vadd.s32 %v263_v48, %v262_v38  ;;  %v354_v32 = vsel %vm353_vm8, %v345_v22, %v352_v29  ;;  %v614_v48 = vld [vmem:[#allocation7 + $0x8] sm:$0xff] }
 0x121   :  { %v138_v56 = vpop.permute.xlu1 %137  ;;  %v276_v17 = vadd.s32 %v275_v8, %v274_v55  ;;  %v356_v38 = vsel %vm355_vm9, %v346_v33, %v354_v32  ;;  %515 = vmatpush.bf16.msra.mxu1 %v614_v48 }
 0x122   :  { %v267_v62 = vrot.slane %v266_v51, 2  ;;  %vm146_vm6 = vcmp.eq.s32.totalorder %v138_v56, %v804_v4  ;;  %v287_v4 = vcvt.s32.f32 %v264_v63 }
 0x123   :  { %v154_v0 = vsel %vm146_vm6, 1, %v746_v1  ;;  %v289_v28 = vcvt.s32.f32 %v276_v17 }
 0x124   :  { %v268_v5 = vadd.s32 %v267_v62, %v266_v51  ;;  %v234_v6 = vadd.s32 %v226_v61, %v154_v0  ;;  %v295_v23 = vpack.c.bf16 %v287_v4, %v287_v4  ;;  %v633_v51 = vld [vmem:[%s878_s4] ss:$0 sm:$0xff] }
 0x125   :  { %v297_v36 = vpack.c.bf16 %v289_v28, %v289_v28  ;;  %516 = vmatpush.bf16.msra.mxu1 %v613_v49 }
 0x126   :  { %v269_v11 = vrot.slane %v268_v5, 1  ;;  %v277_v12 = vrot.slane %v234_v6, 4  ;;  %v347_v31 = vunpack.c.l.b16 %v295_v23 }
 0x127   :  { %v349_v42 = vunpack.c.l.b16 %v297_v36 }
 0x128   :  { %v270_v16 = vadd.s32 %v269_v11, %v268_v5  ;;  %v278_v1 = vadd.s32 %v277_v12, %v234_v6  ;;  %v358_v39 = vsel %vm357_vm10, %v347_v31, %v356_v38 }
 0x12a   :  { %v288_v20 = vcvt.s32.f32 %v270_v16  ;;  %v279_v21 = vrot.slane %v278_v1, 2 }
 0x12c   :  { %v296_v26 = vpack.c.bf16 %v288_v20, %v288_v20  ;;  %v280_v27 = vadd.s32 %v279_v21, %v278_v1 }
 0x12e   :  { %v281_v30 = vrot.slane %v280_v27, 1  ;;  %v348_v34 = vunpack.c.l.b16 %v296_v26 }
 0x130   :  { %v282_v35 = vadd.s32 %v281_v30, %v280_v27  ;;  %v360_v41 = vsel %vm359_vm11, %v348_v34, %v358_v39 }
 0x131   :  { %v362_v44 = vsel %vm361_vm12, %v349_v42, %v360_v41 }
 0x132   :  { %v290_v37 = vcvt.s32.f32 %v282_v35 }
 0x134   :  { %v298_v40 = vpack.c.bf16 %v290_v37, %v290_v37 }
 0x136   :  { %v350_v43 = vunpack.c.l.b16 %v298_v40 }
 0x138   :  { %v364_v45 = vsel %vm363_vm13, %v350_v43, %v362_v44 }
 0x139   :  { %v365_v46 = vpack.c.b16 %v364_v45, %v364_v45 }
 0x13b   :  { %423 = vmatmul.bf16.vlgmr.msra.gmra.mxu0 %v365_v46 }
 0x188   :  { %v431_v50 = vpop.permute.xlu0 %430 }
 0x1b8   :  { %v424_v52 = vpop.f32.mrf.mxu0 }
 0x1b9   :  { %v433_v53 = vmul.f32 %v431_v50, %v424_v52 }
 0x1bb   :  { %v438_v54 = vadd.f32 %v633_v51, %v433_v53 }
 0x1bd   :  { %637 = vtanh.f32 %v438_v54 }
 0x1c0   :  { %v426_v55 = vpop.f32.mrf.mxu0 }
 0x1c3   :  { %v638_v56 = vpop.eup %637 }
 0x1c4   :  { %v440_v57 = vpack.c.bf16 %v638_v56, %v638_v56 }
 0x1c6   :  { %517 = vmatmul.bf16.vlgmr.msra.gmra.mxu1 %v440_v57 }
 0x243   :  { %v518_v60 = vpop.f32.mrf.mxu1 }
 0x244   :  { %v519_v61 = vadd.f32 %v634_v58, %v518_v60 }
 0x246   :  { %522 = vst [vmem:[#allocation8] sm:$0xff] %v519_v61 }
 0x247   :  { %533 = dma.vmem_to_hbm [thread:$0]  %s529_s22, 128, %s531_s25, [#allocation4]  }
 0x24b   :  { %v520_v62 = vpop.f32.mrf.mxu1 }
 0x24c   :  { %739 = dma.done.wait [#allocation4], 128  }
 0x24d   :  { %740 = vsyncadd [#allocation4], 4294967168 }
 0x24e   :  { %538 = vsyncpa [#allocation3], 1 }
 0x24f   :  { %539 = vsyncpa [#allocation6], 1 }
 0x250   :  { %540 = vsyncpa [#allocation4], 1 }

</bundles_post_ra>
